<compile_context>
chip_gen: v6e
topology: v6e:2x2x1
jax: 0.10.0
libtpu: 0.0.40
codegen_flags: <defaults>
</compile_context>

<pallas_src>
import functools

import jax
import jax.numpy as jnp
from jax import lax
from jax.experimental import pallas as pl
from jax.experimental.pallas import tpu as pltpu

N_IN = 2
NEURONS = 10
LANE = 128


def _silu_and_grad(z):
    # sigmoid via exp + reciprocal: both go to the EUP slot (VALU carries the
    # ~200 elementwise ops/point of the fwd+bwd chain; EUP has slack).
    e = jnp.exp(-z)
    s = pl.reciprocal(1.0 + e, approx=False)    # exact -> keeps 1e-5 tolerance
    return z * s, s * (1.0 + z * (1.0 - s))


def _force_kernel(x_ref, vec_ref, mat_ref, out_ref, *, n_in, neurons, cw):
    # x_ref:   (chunks_per_block, n_in, cw)  points on the lane axis
    # vec_ref: (neurons, n_in + 4)           [ W1 | b1 | b2 | b3 | -W4^T ]
    # mat_ref: (4, neurons, neurons)         [ W2, W3, W2^T, W3^T ]
    # out_ref: (chunks_per_block, n_in, cw)  force = -d(sum bias)/dx
    w1 = vec_ref[:, 0:n_in]                       # (neurons, n_in)
    b1 = vec_ref[:, n_in:n_in + 1]                # (neurons, 1)
    b2 = vec_ref[:, n_in + 1:n_in + 2]
    b3 = vec_ref[:, n_in + 2:n_in + 3]
    neg_w4t = vec_ref[:, n_in + 3:n_in + 4]       # -(W4^T): folds final negate
    w2, w3 = mat_ref[0], mat_ref[1]
    w2t, w3t = mat_ref[2], mat_ref[3]

    nchunks = x_ref.shape[0]

    # Inner lane-chunk loop: the big grid block amortizes DMA + per-step
    # overhead while per-chunk live intermediates stay (16, cw)-sized.
    @pl.loop(0, nchunks)
    def _(c):
        x = x_ref[c]                                          # (n_in, cw)

        # ---- forward MLP (transposed layout: H = W @ A + b) ----
        # First layer has K = n_in = 2: VPU broadcast MACs beat a tiny-K MXU op.
        h1 = jnp.broadcast_to(b1, (neurons, cw))
        for i in range(n_in):
            h1 = h1 + w1[:, i:i + 1] * x[i:i + 1, :]
        a1, d1 = _silu_and_grad(h1)
        h2 = jnp.dot(w2, a1, preferred_element_type=jnp.float32) + b2
        a2, d2 = _silu_and_grad(h2)
        h3 = jnp.dot(w3, a2, preferred_element_type=jnp.float32) + b3
        _, d3 = _silu_and_grad(h3)          # bias value itself is not needed

        # ---- backward: -(d sum(bias)/dX); negation already folded into -W4^T
        gh3 = neg_w4t * d3                                            # (neurons, cw)
        gh2 = jnp.dot(w3t, gh3, preferred_element_type=jnp.float32) * d2
        gh1 = jnp.dot(w2t, gh2, preferred_element_type=jnp.float32) * d1
        # force[i, :] = sum over neurons of the grad chain.
        force = lax.dot_general(w1, gh1, (((0,), (0,)), ((), ())),
                                preferred_element_type=jnp.float32)   # (n_in, cw)
        out_ref[c] = force


def _force_chunked(xc, params, *, chunks_per_block):
    """xc: (n_chunks, n_in, cw) pre-chunked lane-dense points (f32).

    Returns force in the same chunked layout.  Callers that can produce /
    consume this layout directly should use this entry point and skip the
    wrapper's transpose passes.
    """
    W1, b1, W2, b2, W3, b3, W4 = params
    n_chunks, n_in, cw = xc.shape
    neurons = W1.shape[0]
    assert n_chunks % chunks_per_block == 0

    # Packed resident parameter slabs (single DMA each, stay in VMEM).
    vecs = jnp.concatenate(
        [W1.astype(jnp.float32),                           # (neurons, n_in)
         b1.reshape(neurons, 1).astype(jnp.float32),
         b2.reshape(neurons, 1).astype(jnp.float32),
         b3.reshape(neurons, 1).astype(jnp.float32),
         (-W4).reshape(neurons, 1).astype(jnp.float32)],   # fold force = -grad
        axis=1)                                            # (neurons, n_in + 4)
    mats = jnp.stack([W2, W3, W2.T, W3.T]).astype(jnp.float32)  # (4, n, n)

    m = n_chunks * cw
    cost = pl.CostEstimate(flops=1000 * m,
                           transcendentals=6 * m,
                           bytes_accessed=2 * m * n_in * 4)

    kernel = functools.partial(_force_kernel, n_in=n_in, neurons=neurons, cw=cw)
    return pl.pallas_call(
        kernel,
        out_shape=jax.ShapeDtypeStruct((n_chunks, n_in, cw), jnp.float32),
        grid_spec=pltpu.PrefetchScalarGridSpec(
            num_scalar_prefetch=0,
            grid=(n_chunks // chunks_per_block,),
            in_specs=[
                pl.BlockSpec((chunks_per_block, n_in, cw), lambda i: (i, 0, 0)),
                pl.BlockSpec((neurons, n_in + 4), lambda i: (0, 0)),
                pl.BlockSpec((4, neurons, neurons), lambda i: (0, 0, 0)),
            ],
            out_specs=pl.BlockSpec((chunks_per_block, n_in, cw),
                                   lambda i: (i, 0, 0)),
        ),
        compiler_params=pltpu.CompilerParams(
            dimension_semantics=("parallel",)),
        cost_estimate=cost,
    )(xc, vecs, mats)


def simple_bias_force(x, params, *, tm=4096, cw=512):
    """x: (B, N, n_in) float32. params: torch-layout (W1,b1,W2,b2,W3,b3,W4).

    Returns force = -d(sum bias)/dx, same shape as x.
    tm = points per grid step (multiple of cw); cw = lane-chunk width
    (multiple of 128) for the in-kernel loop.
    """
    W1, _, _, _, _, _, _ = params
    B, N, n_in = x.shape
    M = B * N

    # Chunk / block geometry.
    cw = max(LANE, (cw // LANE) * LANE)
    tm = max(cw, (tm // cw) * cw)
    n_chunks_needed = -(-M // cw)                       # cdiv
    chunks_per_block = max(1, min(tm // cw, n_chunks_needed))
    n_blocks = -(-n_chunks_needed // chunks_per_block)
    n_chunks = n_blocks * chunks_per_block
    mp = n_chunks * cw

    # Single pad + single transpose pass to the chunked lane-dense layout.
    xf = x.reshape(M, n_in).astype(jnp.float32)
    if mp != M:
        xf = jnp.pad(xf, ((0, mp - M), (0, 0)))
    xc = xf.reshape(n_chunks, cw, n_in).transpose(0, 2, 1)   # (n_chunks, n_in, cw)

    out = _force_chunked(xc, params, chunks_per_block=chunks_per_block)

    out = out.transpose(0, 2, 1).reshape(mp, n_in)[:M]
    return out.reshape(B, N, n_in)


def init_params(key, n_in=N_IN, neurons=NEURONS):
    """Deterministic init mimicking torch.nn.Linear (U(-1/sqrt(fan_in), ...))."""
    def linear(key, fan_in, fan_out, bias=True):
        kw, kb = jax.random.split(key)
        bound = 1.0 / jnp.sqrt(fan_in)
        W = jax.random.uniform(kw, (fan_out, fan_in), jnp.float32, -bound, bound)
        b = (jax.random.uniform(kb, (fan_out,), jnp.float32, -bound, bound)
             if bias else None)
        return W, b

    k1, k2, k3, k4 = jax.random.split(key, 4)
    W1, b1 = linear(k1, n_in, neurons)
    W2, b2 = linear(k2, neurons, neurons)
    W3, b3 = linear(k3, neurons, neurons)
    W4, _ = linear(k4, neurons, 1, bias=False)
    return (W1, b1, W2, b2, W3, b3, W4)


def reference_force(x, params):
    """Pure-JAX reference: -grad of sum(bias) wrt x (mirrors torch autograd)."""
    W1, b1, W2, b2, W3, b3, W4 = params

    def bias_sum(xf):
        h = jax.nn.silu(xf @ W1.T + b1)
        h = jax.nn.silu(h @ W2.T + b2)
        h = jax.nn.silu(h @ W3.T + b3)
        return jnp.sum(h @ W4.T)

    g = jax.grad(bias_sum)(x.reshape(-1, x.shape[-1]))
    return -g.reshape(x.shape)


if __name__ == "__main__":
    key = jax.random.PRNGKey(0)
    kx, kp = jax.random.split(key)

    # Small shapes consistent with the module (n_in = 2 descriptor dims).
    # 4 x 200 = 800 points: with tm=512 / cw=256 this exercises a multi-block
    # grid (2 blocks), the in-kernel multi-chunk loop (2 chunks/block) and the
    # zero-padded tail (padded to 1024 points).
    B, N = 4, 200
    x = jax.random.normal(kx, (B, N, N_IN), dtype=jnp.float32)
    params = init_params(kp)
    ref = reference_force(x, params)

    force = simple_bias_force(x, params, tm=512, cw=256)
    force = jax.block_until_ready(force)
    assert force.shape == x.shape
    assert jnp.allclose(force, ref, atol=1e-5, rtol=1e-5), \
        "mismatch vs JAX autograd reference (small-tile path)"

    # Default (large-tile) configuration: single block, single DMA.
    force_d = simple_bias_force(x, params)
    force_d = jax.block_until_ready(force_d)
    assert jnp.allclose(force_d, ref, atol=1e-5, rtol=1e-5), \
        "mismatch vs JAX autograd reference (default-tile path)"

    print("KERNEL_OK")
</pallas_src>

<mosaic_0001>
module attributes {stable_mosaic.version = 11 : i64} {
  func.func @_force_kernel(%arg0: i32, %arg1: memref<2x2x256xf32, #tpu.memory_space<vmem>>, %arg2: memref<10x6xf32, #tpu.memory_space<vmem>>, %arg3: memref<4x10x10xf32, #tpu.memory_space<vmem>>, %arg4: memref<2x2x256xf32, #tpu.memory_space<vmem>>) attributes {dimension_semantics = [#tpu.dimension_semantics<parallel>], iteration_bounds = array<i64: 2>, scalar_prefetch = 0 : i64, scratch_operands = 0 : i64, tpu.core_type = #tpu.core_type<tc>, window_params = [{transform_indices = @transform_0, window_bounds = array<i64: 2, 2, 256>}, {pipeline_mode = #tpu.pipeline_mode<synchronous>, transform_indices = @transform_1, window_bounds = array<i64: 10, 6>}, {pipeline_mode = #tpu.pipeline_mode<synchronous>, transform_indices = @transform_2, window_bounds = array<i64: 4, 10, 10>}, {transform_indices = @transform_3, window_bounds = array<i64: 2, 2, 256>}]} {
    %c0 = arith.constant 0 : index
    %c0_0 = arith.constant 0 : index
    %0 = vector.load %arg2[%c0, %c0_0] : memref<10x6xf32, #tpu.memory_space<vmem>>, vector<10x2xf32>
    %c0_1 = arith.constant 0 : index
    %c2 = arith.constant 2 : index
    %1 = vector.load %arg2[%c0_1, %c2] : memref<10x6xf32, #tpu.memory_space<vmem>>, vector<10x1xf32>
    %c0_2 = arith.constant 0 : index
    %c3 = arith.constant 3 : index
    %2 = vector.load %arg2[%c0_2, %c3] : memref<10x6xf32, #tpu.memory_space<vmem>>, vector<10x1xf32>
    %c0_3 = arith.constant 0 : index
    %c4 = arith.constant 4 : index
    %3 = vector.load %arg2[%c0_3, %c4] : memref<10x6xf32, #tpu.memory_space<vmem>>, vector<10x1xf32>
    %c0_4 = arith.constant 0 : index
    %c5 = arith.constant 5 : index
    %4 = vector.load %arg2[%c0_4, %c5] : memref<10x6xf32, #tpu.memory_space<vmem>>, vector<10x1xf32>
    %c0_5 = arith.constant 0 : index
    %c0_6 = arith.constant 0 : index
    %c0_7 = arith.constant 0 : index
    %5 = vector.load %arg3[%c0_5, %c0_6, %c0_7] : memref<4x10x10xf32, #tpu.memory_space<vmem>>, vector<1x10x10xf32>
    %6 = vector.shape_cast %5 : vector<1x10x10xf32> to vector<10x10xf32>
    %c1 = arith.constant 1 : index
    %c0_8 = arith.constant 0 : index
    %c0_9 = arith.constant 0 : index
    %7 = vector.load %arg3[%c1, %c0_8, %c0_9] : memref<4x10x10xf32, #tpu.memory_space<vmem>>, vector<1x10x10xf32>
    %8 = vector.shape_cast %7 : vector<1x10x10xf32> to vector<10x10xf32>
    %c2_10 = arith.constant 2 : index
    %c0_11 = arith.constant 0 : index
    %c0_12 = arith.constant 0 : index
    %9 = vector.load %arg3[%c2_10, %c0_11, %c0_12] : memref<4x10x10xf32, #tpu.memory_space<vmem>>, vector<1x10x10xf32>
    %10 = vector.shape_cast %9 : vector<1x10x10xf32> to vector<10x10xf32>
    %c3_13 = arith.constant 3 : index
    %c0_14 = arith.constant 0 : index
    %c0_15 = arith.constant 0 : index
    %11 = vector.load %arg3[%c3_13, %c0_14, %c0_15] : memref<4x10x10xf32, #tpu.memory_space<vmem>>, vector<1x10x10xf32>
    %12 = vector.shape_cast %11 : vector<1x10x10xf32> to vector<10x10xf32>
    %c0_i32 = arith.constant 0 : i32
    %c2_i32 = arith.constant 2 : i32
    %13 = arith.addi %c0_i32, %c2_i32 : i32
    %c1_i32 = arith.constant 1 : i32
    scf.for %arg5 = %c0_i32 to %13 step %c1_i32  : i32 {
      %c1_i32_17 = arith.constant 1 : i32
      %14 = arith.muli %arg5, %c1_i32_17 : i32
      %c0_i32_18 = arith.constant 0 : i32
      %15 = arith.addi %c0_i32_18, %14 : i32
      %16 = arith.index_cast %15 : i32 to index
      %c0_19 = arith.constant 0 : index
      %c0_20 = arith.constant 0 : index
      %17 = vector.load %arg1[%16, %c0_19, %c0_20] : memref<2x2x256xf32, #tpu.memory_space<vmem>>, vector<1x2x256xf32>
      %18 = vector.shape_cast %17 : vector<1x2x256xf32> to vector<2x256xf32>
      %19 = vector.shape_cast %1 : vector<10x1xf32> to vector<10x1xf32>
      %20 = vector.broadcast %19 : vector<10x1xf32> to vector<10x256xf32>
      %21 = vector.extract_strided_slice %0 {offsets = [0, 0], sizes = [10, 1], strides = [1, 1]} : vector<10x2xf32> to vector<10x1xf32>
      %22 = vector.extract_strided_slice %18 {offsets = [0, 0], sizes = [1, 256], strides = [1, 1]} : vector<2x256xf32> to vector<1x256xf32>
      %23 = vector.broadcast %21 : vector<10x1xf32> to vector<10x256xf32>
      %24 = vector.broadcast %22 : vector<1x256xf32> to vector<10x256xf32>
      %25 = arith.mulf %23, %24 : vector<10x256xf32>
      %26 = arith.addf %20, %25 : vector<10x256xf32>
      %27 = vector.extract_strided_slice %0 {offsets = [0, 1], sizes = [10, 1], strides = [1, 1]} : vector<10x2xf32> to vector<10x1xf32>
      %28 = vector.extract_strided_slice %18 {offsets = [1, 0], sizes = [1, 256], strides = [1, 1]} : vector<2x256xf32> to vector<1x256xf32>
      %29 = vector.broadcast %27 : vector<10x1xf32> to vector<10x256xf32>
      %30 = vector.broadcast %28 : vector<1x256xf32> to vector<10x256xf32>
      %31 = arith.mulf %29, %30 : vector<10x256xf32>
      %32 = arith.addf %26, %31 : vector<10x256xf32>
      %cst = arith.constant 0.000000e+00 : f32
      %33 = vector.broadcast %cst : f32 to vector<10x256xf32>
      %34 = arith.subf %33, %32 : vector<10x256xf32>
      %35 = math.exp %34 : vector<10x256xf32>
      %cst_21 = arith.constant 1.000000e+00 : f32
      %36 = vector.broadcast %cst_21 : f32 to vector<10x256xf32>
      %37 = arith.addf %36, %35 : vector<10x256xf32>
      %38 = tpu.reciprocal %37 : vector<10x256xf32> -> vector<10x256xf32>
      %39 = arith.mulf %32, %38 : vector<10x256xf32>
      %cst_22 = arith.constant 1.000000e+00 : f32
      %40 = vector.broadcast %cst_22 : f32 to vector<10x256xf32>
      %41 = arith.subf %40, %38 : vector<10x256xf32>
      %42 = arith.mulf %32, %41 : vector<10x256xf32>
      %cst_23 = arith.constant 1.000000e+00 : f32
      %43 = vector.broadcast %cst_23 : f32 to vector<10x256xf32>
      %44 = arith.addf %43, %42 : vector<10x256xf32>
      %45 = arith.mulf %38, %44 : vector<10x256xf32>
      %cst_24 = arith.constant dense<0.000000e+00> : vector<10x256xf32>
      %46 = tpu.matmul %6, %39, %cst_24 {dimension_numbers = #tpu.dot_dimension_numbers<[1], [0], [0], [1], [0, 0, 1, 1], [], []>} : vector<10x10xf32>, vector<10x256xf32>, vector<10x256xf32> -> vector<10x256xf32>
      %47 = vector.broadcast %2 : vector<10x1xf32> to vector<10x256xf32>
      %48 = arith.addf %46, %47 : vector<10x256xf32>
      %cst_25 = arith.constant 0.000000e+00 : f32
      %49 = vector.broadcast %cst_25 : f32 to vector<10x256xf32>
      %50 = arith.subf %49, %48 : vector<10x256xf32>
      %51 = math.exp %50 : vector<10x256xf32>
      %cst_26 = arith.constant 1.000000e+00 : f32
      %52 = vector.broadcast %cst_26 : f32 to vector<10x256xf32>
      %53 = arith.addf %52, %51 : vector<10x256xf32>
      %54 = tpu.reciprocal %53 : vector<10x256xf32> -> vector<10x256xf32>
      %55 = arith.mulf %48, %54 : vector<10x256xf32>
      %cst_27 = arith.constant 1.000000e+00 : f32
      %56 = vector.broadcast %cst_27 : f32 to vector<10x256xf32>
      %57 = arith.subf %56, %54 : vector<10x256xf32>
      %58 = arith.mulf %48, %57 : vector<10x256xf32>
      %cst_28 = arith.constant 1.000000e+00 : f32
      %59 = vector.broadcast %cst_28 : f32 to vector<10x256xf32>
      %60 = arith.addf %59, %58 : vector<10x256xf32>
      %61 = arith.mulf %54, %60 : vector<10x256xf32>
      %cst_29 = arith.constant dense<0.000000e+00> : vector<10x256xf32>
      %62 = tpu.matmul %8, %55, %cst_29 {dimension_numbers = #tpu.dot_dimension_numbers<[1], [0], [0], [1], [0, 0, 1, 1], [], []>} : vector<10x10xf32>, vector<10x256xf32>, vector<10x256xf32> -> vector<10x256xf32>
      %63 = vector.broadcast %3 : vector<10x1xf32> to vector<10x256xf32>
      %64 = arith.addf %62, %63 : vector<10x256xf32>
      %cst_30 = arith.constant 0.000000e+00 : f32
      %65 = vector.broadcast %cst_30 : f32 to vector<10x256xf32>
      %66 = arith.subf %65, %64 : vector<10x256xf32>
      %67 = math.exp %66 : vector<10x256xf32>
      %cst_31 = arith.constant 1.000000e+00 : f32
      %68 = vector.broadcast %cst_31 : f32 to vector<10x256xf32>
      %69 = arith.addf %68, %67 : vector<10x256xf32>
      %70 = tpu.reciprocal %69 : vector<10x256xf32> -> vector<10x256xf32>
      %cst_32 = arith.constant 1.000000e+00 : f32
      %71 = vector.broadcast %cst_32 : f32 to vector<10x256xf32>
      %72 = arith.subf %71, %70 : vector<10x256xf32>
      %73 = arith.mulf %64, %72 : vector<10x256xf32>
      %cst_33 = arith.constant 1.000000e+00 : f32
      %74 = vector.broadcast %cst_33 : f32 to vector<10x256xf32>
      %75 = arith.addf %74, %73 : vector<10x256xf32>
      %76 = arith.mulf %70, %75 : vector<10x256xf32>
      %77 = vector.broadcast %4 : vector<10x1xf32> to vector<10x256xf32>
      %78 = arith.mulf %77, %76 : vector<10x256xf32>
      %cst_34 = arith.constant dense<0.000000e+00> : vector<10x256xf32>
      %79 = tpu.matmul %12, %78, %cst_34 {dimension_numbers = #tpu.dot_dimension_numbers<[1], [0], [0], [1], [0, 0, 1, 1], [], []>} : vector<10x10xf32>, vector<10x256xf32>, vector<10x256xf32> -> vector<10x256xf32>
      %80 = arith.mulf %79, %61 : vector<10x256xf32>
      %cst_35 = arith.constant dense<0.000000e+00> : vector<10x256xf32>
      %81 = tpu.matmul %10, %80, %cst_35 {dimension_numbers = #tpu.dot_dimension_numbers<[1], [0], [0], [1], [0, 0, 1, 1], [], []>} : vector<10x10xf32>, vector<10x256xf32>, vector<10x256xf32> -> vector<10x256xf32>
      %82 = arith.mulf %81, %45 : vector<10x256xf32>
      %cst_36 = arith.constant dense<0.000000e+00> : vector<2x256xf32>
      %83 = tpu.matmul %0, %82, %cst_36 {dimension_numbers = #tpu.dot_dimension_numbers<[0], [0], [1], [1], [0, 1, 1, 1], [], []>} : vector<10x2xf32>, vector<10x256xf32>, vector<2x256xf32> -> vector<2x256xf32>
      %84 = arith.index_cast %15 : i32 to index
      %c0_37 = arith.constant 0 : index
      %c0_38 = arith.constant 0 : index
      %85 = vector.load %arg4[%84, %c0_37, %c0_38] : memref<2x2x256xf32, #tpu.memory_space<vmem>>, vector<1x2x256xf32>
      %86 = vector.shape_cast %85 : vector<1x2x256xf32> to vector<2x256xf32>
      %87 = vector.shape_cast %83 : vector<2x256xf32> to vector<1x2x256xf32>
      tpu.vector_store %arg4[%84, %c0_37, %c0_38], %87 {strides = array<i32>} : memref<2x2x256xf32, #tpu.memory_space<vmem>>, vector<1x2x256xf32>,
    }
    %c2_i32_16 = arith.constant 2 : i32
    return
  }
  func.func @transform_0(%arg0: i32) -> (i32, i32, i32) {
    %c0_i32 = arith.constant 0 : i32
    %c0_i32_0 = arith.constant 0 : i32
    %c0_i32_1 = arith.constant 0 : i32
    return %arg0, %c0_i32, %c0_i32_0 : i32, i32, i32
  }
  func.func @transform_1(%arg0: i32) -> (i32, i32) {
    %c0_i32 = arith.constant 0 : i32
    %c0_i32_0 = arith.constant 0 : i32
    %c0_i32_1 = arith.constant 0 : i32
    return %c0_i32, %c0_i32_0 : i32, i32
  }
  func.func @transform_2(%arg0: i32) -> (i32, i32, i32) {
    %c0_i32 = arith.constant 0 : i32
    %c0_i32_0 = arith.constant 0 : i32
    %c0_i32_1 = arith.constant 0 : i32
    %c0_i32_2 = arith.constant 0 : i32
    return %c0_i32, %c0_i32_0, %c0_i32_1 : i32, i32, i32
  }
  func.func @transform_3(%arg0: i32) -> (i32, i32, i32) {
    %c0_i32 = arith.constant 0 : i32
    %c0_i32_0 = arith.constant 0 : i32
    %c0_i32_1 = arith.constant 0 : i32
    return %arg0, %c0_i32, %c0_i32_0 : i32, i32, i32
  }
}

</mosaic_0001>

<bundles_post_ra>
// kernel: tpu_custom_call.1
= control target key start
LH: loop header
LB: loop body
LE: loop exit
PB: predicated region body
PF: predicated region fallthrough
CT: control target
= control target key end

     0   :  { %8 = vsyncpa [#allocation3], 0  ;;  %s1514_s0 = inlined_call_operand.vmem [shape: f32[4,2,256], index: 0, kind: input, shape index: {}]   ;;  %s1515_s1 = inlined_call_operand.vmem [shape: f32[10,6], index: 1, kind: input, shape index: {}]   ;;  %s1516_s2 = inlined_call_operand.vmem [shape: f32[4,10,10], index: 2, kind: input, shape index: {}]   ;;  %s1517_s3 = inlined_call_operand.hbm [shape: f32[4,2,256], index: 3, kind: output, shape index: {}]  }
   0x1   :  { %10 = vsyncpa [#allocation3 + $0x1], 0  ;;  %s1262_s12 = smov 0   ;;  %s1264_s13 = smov 0  }
   0x2   :  { %s1266_s14 = smov 0   ;;  %s1268_s15 = smov 0  }
   0x3 LB: > { %s1283_s16 = sadd.s32 4294967295, %s1226_s15   ;;  %s999_s17 = sadd.s32 4294967294, %s1226_s15   ;;  %s1226_s15 = sphi %s1268_s15, %s1523_s15   ;;  %s1222_s14 = sphi %s1266_s14, %s1522_s14   ;;  %s1218_s13 = sphi %s1264_s13, %s1521_s13   ;;  %s1214_s12 = sphi %s1262_s12, %s1520_s12  }
   0x4   : > { %s1287_s18 = sadd.s32 1, %s1226_s15   ;;  %s91_s19 = sadd.s32 1, %s1222_s14 }
   0x5   : > { %s88_s20 = ssub.s32 %s1226_s15, %s1287_s18  ;;  %p101_p0 = scmp.ne.s32.totalorder %s1222_s14, %s1218_s13 }
   0x6   : > { %p89_p1 = scmp.eq.s32.totalorder %s88_s20, 0  ;;  %p102_p2 = scmp.eq.s32.totalorder %s1283_s16, 1 }
   0x7   : > { %p107_p3 = scmp.ne.s32.totalorder %s1218_s13, %s1214_s12  ;;  %p108_p4 = scmp.eq.s32.totalorder %s999_s17, 1 }
   0x8   : > { %s1298_s21 = scalar_select %p89_p1, %s1222_s14, %s91_s19  }
   0x9   : > { %p1300_p5 = por %p102_p2, %p101_p0  ;;  %p1304_p6 = por %p108_p4, %p107_p3 }
   0xa   : > { %p1002_p7 = scmp.ge.s32.totalorder %s1226_s15, 1  ;;  %p142_p8 = scmp.lt.s32.totalorder %s1226_s15, 3 }
   0xc   : > { %p143_p9 = pnand %p1002_p7, %p142_p8 }
   0xd   : > { %s164_s24 = sand.u32 (!%p143_p9), 1, %s1218_s13   ;;  %s1004_s25 = sshll.u32 (!%p143_p9), %s1283_s16, 1 }
   0xe   : > { %146 = sbr.rel (%p143_p9) target bundleno = 1313 (0x521), region = 32  ;;  %s1329_s5 = sshll.u32 (!%p143_p9), %s164_s24, 3 }
   0xf   : > { %p168_p10 = scmp.lt.s32.totalorder (!%p143_p9), %s1004_s25, 3  ;;  %s166_s9 = scalar_lea.vmem (!%p143_p9), [#allocation2], %s1329_s5 }
  0x10   : > { %s1372_s10 = smov (!%p143_p9), 0  }
  0x13   : > { %v1315_v0 = vld [vmem:[%s1515_s1] sm:$0xff]  ;;  %v1320_v1 = vld [vmem:[%s1515_s1 + $0x8] sm:$0x3]  ;;  %v1339_v4 = vld [vmem:[%s1516_s2 + $0x10] sm:$0xff]  ;;  %s1525_s25 = smov (!%p168_p10, %s1004_s25), 3 }
  0x14   : > { %v1325_v2 = vld [vmem:[%s1516_s2] sm:$0xff]  ;;  %v1334_v3 = vld [vmem:[%s1516_s2 + $0x8] sm:$0x3]  ;;  %v1349_v6 = vld [vmem:[%s1516_s2 + $0x18] sm:$0x3]  ;;  %s1042_s4 = sshll.u32 %s1525_s25, 2 }
  0x15   : > { %v1344_v5 = vld [vmem:[%s1516_s2 + $0x20] sm:$0xff]  ;;  %v1354_v7 = vld [vmem:[%s1516_s2 + $0x28] sm:$0x3]  ;;  %v1359_v8 = vld [vmem:[%s1516_s2 + $0x30] sm:$0xff]  ;;  %s1369_s8 = scalar_lea.vmem %s1514_s0, %s1042_s4 }
  0x16   : > { %v1364_v9 = vld [vmem:[%s1516_s2 + $0x38] sm:$0x3] }
  0x17 LB: >> { %v1232_v10 = vmov 0   ;;  %v1233_v11 = vmov 1   ;;  %v1234_v12 = vmov 2   ;;  %v1235_v13 = vmov 0.0   ;;  %s1043_s25 = sshll.u32 %s1230_s10, 2  ;;  %s193_s10 = sadd.s32 1, %s1230_s10   ;;  %s1230_s10 = sphi %s1372_s10, %s193_s10  }
  0x18   : >> { %1105 = vset.pattern.permute.xlu1 %v1232_v10  ;;  %1103 = vset.pattern.permute.xlu0 %v1232_v10  ;;  %v1236_v14 = vmov 3   ;;  %v217_v15 = vlaneseq  ;;  %s196_s11 = scalar_lea.vmem %s1369_s8, %s1043_s25  ;;  %vm332_vm0 = vcmask 1041408   ;;  %vm325_vm1 = vcmask 80896   ;;  %s911_s17 = scalar_lea.vmem %s166_s9, %s1043_s25 [#allocation2] }
  0x19   : >> { %209 = vperm.xlu1 %1105, %v1315_v0   ;;  %213 = vperm.xlu0 %1103, %v1320_v1   ;;  %v197_v19 = vld [vmem:[%s196_s11] sm:$0xf]  ;;  %p190_p11 = scmp.ge.s32.totalorder %s193_s10, 2  }
  0x1a   : >> { %403 = vmatprep.mubr.f32.mxu0 %v1235_v13  ;;  %540 = vmatprep.mubr.f32.mxu1 %v1235_v13  ;;  %v218_v16 = vshrl.u32 %v217_v15, 7  ;;  %s1046_s19 = sshll.u32 (%p190_p11), %s1283_s16, 7  ;;  %s928_s28 = sshll.u32 (%p190_p11), %s166_s9, 4  ;;  %s1470_s28 = int_to_ptr.vmem [resolvable:$true] %s928_s28 }
  0x1b   : > { %s1466_s27 = scalar_lea.hbm (%p190_p11), %s1517_s3, %s1046_s19  ;;  %s1474_s29 = scalar_lea.sflag (%p190_p11), [#allocation3], %s164_s24 }
  0x1c   : >> { %v219_v17 = vsub.s32 0, %v218_v16  ;;  %v223_v18 = vsub.s32 2, %v218_v16  ;;  %v253_v20 = vsub.s32 1, %v218_v16  ;;  %v257_v21 = vsub.s32 3, %v218_v16  ;;  %s1162_s30 = scalar_lea.vmem (%p190_p11), %s1470_s28, 128  ;;  %s1239_s16 = smov (%p190_p11), [#allocation2]  }
  0x1d   : >> { %1106 = vset.pattern.permute.xlu1 %v1233_v11  ;;  %1104 = vset.pattern.permute.xlu0 %v1234_v12  ;;  %p1163_p12 = scmp.ne.s32.totalorder (%p190_p11), %s1470_s28, %s1162_s30  ;;  %s1166_s4 = sshll.u32 (%p190_p11), %s1239_s16, 4  ;;  %s1167_s4 = int_to_ptr.vmem [resolvable:$false] %s1166_s4 }
  0x1e   : >> { %248 = vperm.xlu1 %1106, %v1320_v1   ;;  %205 = vperm.xlu0 %1104, %v1320_v1   ;;  %v220_v22 = vrot.slane %v197_v19, %v219_v17  ;;  %v224_v23 = vrot.slane %v197_v19, %v223_v18  ;;  %v254_v24 = vrot.slane %v197_v19, %v253_v20  ;;  %s1168_s6 = scalar_lea.vmem (%p190_p11), %s1167_s4, 256  ;;  %p1169_p1 = scmp.lt.s32.totalorder (%p190_p11), %s1470_s28, %s1167_s4 }
  0x1f   : >> { %v258_v25 = vrot.slane %v197_v19, %v257_v21  ;;  %p1164_p13 = pnand (%p190_p11), %p1163_p12, %p1300_p5  ;;  %p1170_p2 = scmp.lt.s32.totalorder (%p190_p11), %s1168_s6, %s1162_s30 }
  0x20   : >> { %v230_v27 = vrot.slane %v220_v22, %v219_v17  ;;  %v234_v28 = vrot.slane %v224_v23, %v219_v17  ;;  %v264_v30 = vrot.slane %v254_v24, %v253_v20 }
  0x21   : >> { %v268_v31 = vrot.slane %v258_v25, %v253_v20  ;;  %p1165_p0 = pneg (%p190_p11), %p1164_p13  ;;  %p1171_p3 = por (%p190_p11), %p1170_p2, %p1169_p1 }
  0x22   : >> { %1107 = vset.pattern.permute.xlu1 %v1234_v12  ;;  %1108 = vset.pattern.permute.xlu0 %v1233_v11 }
  0x23   : >> { %200 = vperm.xlu1 %1107, %v1315_v0   ;;  %244 = vperm.xlu0 %1108, %v1315_v0   ;;  %p1172_p4 = pnand (%p190_p11), %p1171_p3, %p1165_p0 }
  0x27   : >> { %1109 = vset.pattern.permute.xlu1 %v1236_v14 }
  0x28   : >> { %322 = vperm.xlu1 %1109, %v1320_v1  }
  0x2c   : >> { %318 = vperm.xlu1 %1109, %v1315_v0  }
  0x94   : >> { %v210_v26 = vpop.permute.xlu1 %209  ;;  %v214_v29 = vpop.permute.xlu0 %213 }
  0x95   : >> { %v237_v32 = vmul.f32 %v230_v27, %v214_v29  ;;  %v238_v33 = vmul.f32 %v234_v28, %v214_v29  ;;  %v235_v42 = vmul.f32 %v230_v27, %v210_v26  ;;  %v236_v43 = vmul.f32 %v234_v28, %v210_v26 }
  0x99   : >> { %v249_v34 = vpop.permute.xlu1 %248  ;;  %v206_v35 = vpop.permute.xlu0 %205 }
  0x9a   : >> { %v271_v36 = vmul.f32 %v264_v30, %v249_v34  ;;  %v272_v37 = vmul.f32 %v268_v31, %v249_v34  ;;  %v241_v38 = vadd.f32 %v237_v32, %v206_v35  ;;  %v242_v39 = vadd.f32 %v238_v33, %v206_v35 }
  0x9c   : >> { %v275_v40 = vadd.f32 %v271_v36, %v241_v38  ;;  %v276_v41 = vadd.f32 %v272_v37, %v242_v39  ;;  %v1237_v39 = vmov 4  }
  0x9d   : >> { %1111 = vset.pattern.permute.xlu1 %v1237_v39  ;;  %1110 = vset.pattern.permute.xlu0 %v1237_v39 }
  0x9e   : >> { %v279_v44 = vsub.f32 0.0, %v275_v40  ;;  %v280_v45 = vsub.f32 0.0, %v276_v41  ;;  %v201_v46 = vpop.permute.xlu1 %200  ;;  %v245_v47 = vpop.permute.xlu0 %244  ;;  %457 = vperm.xlu1 %1111, %v1315_v0   ;;  %461 = vperm.xlu0 %1110, %v1320_v1  }
  0x9f   : >> { %v239_v48 = vadd.f32 %v235_v42, %v201_v46  ;;  %v240_v49 = vadd.f32 %v236_v43, %v201_v46  ;;  %v269_v50 = vmul.f32 %v264_v30, %v245_v47  ;;  %v270_v51 = vmul.f32 %v268_v31, %v245_v47 }
  0xa0   : >> { %v285_v52 = vmul.f32 1.442695, %v279_v44  ;;  %v287_v53 = vmul.f32 1.442695, %v280_v45 }
  0xa1   : >> { %v273_v54 = vadd.f32 %v269_v50, %v239_v48  ;;  %v274_v55 = vadd.f32 %v270_v51, %v240_v49 }
  0xa2   : >> { %1114 = vpow2.f32 %v285_v52 }
  0xa3   : >> { %1116 = vpow2.f32 %v287_v53  ;;  %v277_v56 = vsub.f32 0.0, %v273_v54  ;;  %v278_v57 = vsub.f32 0.0, %v274_v55 }
  0xa5   : >> { %v281_v58 = vmul.f32 1.442695, %v277_v56  ;;  %v283_v59 = vmul.f32 1.442695, %v278_v57 }
  0xa7   : >> { %1118 = vpow2.f32 %v281_v58 }
  0xa8   : >> { %1120 = vpow2.f32 %v283_v59 }
  0xaf   : >> { %v1115_v60 = vpop.eup %1114 }
  0xb0   : >> { %v1117_v61 = vpop.eup %1116  ;;  %v291_v62 = vadd.f32 1.0, %v1115_v60 }
  0xb1   : >> { %v292_v63 = vadd.f32 1.0, %v1117_v61 }
  0xb2   : >> { %1122 = vrcp.f32 %v291_v62 }
  0xb3   : >> { %1124 = vrcp.f32 %v292_v63 }
  0xb4   : >> { %v1119_v10 = vpop.eup %1118 }
  0xb5   : >> { %v1121_v11 = vpop.eup %1120  ;;  %v289_v12 = vadd.f32 1.0, %v1119_v10 }
  0xb6   : >> { %v290_v14 = vadd.f32 1.0, %v1121_v11 }
  0xb7   : >> { %1126 = vrcp.f32 %v289_v12 }
  0xb8   : >> { %1128 = vrcp.f32 %v290_v14 }
  0xbf   : >> { %v1123_v15 = vpop.eup %1122 }
  0xc0   : >> { %v1125_v16 = vpop.eup %1124  ;;  %v299_v17 = vmul.f32 %v1123_v15, %v275_v40  ;;  %v303_v18 = vsub.f32 1.0, %v1123_v15 }
  0xc1   : >> { %v300_v19 = vmul.f32 %v1125_v16, %v276_v41  ;;  %v304_v20 = vsub.f32 1.0, %v1125_v16 }
  0xc2   : >> { %v307_v21 = vmul.f32 %v303_v18, %v275_v40  ;;  %v1238_v40 = vmov 5  }
  0xc3   : >> { %1015 = vmatprep.subr.msk.mxu0 %vm332_vm0, %v300_v19  ;;  %v308_v22 = vmul.f32 %v304_v20, %v276_v41  ;;  %1113 = vset.pattern.permute.xlu0 %v1238_v40  ;;  %v323_v41 = vpop.permute.xlu1 %322 }
  0xc4   : >> { %v1127_v23 = vpop.eup %1126  ;;  %1016 = vmatpush1.msk.msra.mxu0 %vm332_vm0, %v299_v17  ;;  %v311_v24 = vadd.f32 1.0, %v307_v21  ;;  %1112 = vset.pattern.permute.xlu1 %v1238_v40 }
  0xc5   : >> { %v1129_v25 = vpop.eup %1128  ;;  %v297_v26 = vmul.f32 %v1127_v23, %v273_v54  ;;  %v301_v27 = vsub.f32 1.0, %v1127_v23  ;;  %v312_v28 = vadd.f32 1.0, %v308_v22  ;;  %590 = vperm.xlu0 %1113, %v1315_v0   ;;  %594 = vperm.xlu1 %1112, %v1320_v1  }
  0xc6   : >> { %v298_v29 = vmul.f32 %v1129_v25, %v274_v55  ;;  %v302_v30 = vsub.f32 1.0, %v1129_v25  ;;  %v1393_v31 = vmul.f32 %v1123_v15, %v311_v24 }
  0xc7   : >> { %v305_v32 = vmul.f32 %v301_v27, %v273_v54  ;;  %v1395_v33 = vmul.f32 %v1125_v16, %v312_v28  ;;  %v319_v42 = vpop.permute.xlu1 %318 }
  0xc8   : >> { %369 = vmatprep.subr.mxu0 %v298_v29  ;;  %v306_v34 = vmul.f32 %v302_v30, %v274_v55 }
  0xc9   : >> { %370 = vmatpush1.msra.mxu0 %v297_v26  ;;  %v309_v35 = vadd.f32 1.0, %v305_v32 }
  0xca   : >> { %1017 = vmatmul.mubr.msk.f32.vlgmr.msra.gmra.mxu0 %vm325_vm1, %v1325_v2  ;;  %v310_v36 = vadd.f32 1.0, %v306_v34 }
  0xcb   : >> { %409 = vmatprep.mubr.f32.mxu0 %v1235_v13  ;;  %v1400_v37 = vmul.f32 %v1127_v23, %v309_v35 }
  0xcc   : >> { %v1402_v38 = vmul.f32 %v1129_v25, %v310_v36 }
  0xce   : >> { %1018 = vmatmul.mubr.msk.f32.gmra.mxu0 %vm325_vm1, %v1334_v3 }
  0xcf   : >> { %677 = vmatprep.mubr.f32.mxu0 %v1235_v13 }
  0xee   : >> { %787 = vxpose.xlu1.b32.start [1/2] (short) (narrow) %v1315_v0, 8 }
  0xf2   : >> { %788 = vxpose.xlu1.b32.end [2/2] (short) (narrow) %v1320_v1, 8 }
 0x18a   : >> { %v405_v43 = vpop.f32.mrf.mxu0 }
 0x18b   : >> { %v406_v44 = vadd.f32 %v405_v43, %v319_v42 }
 0x18c   : >> { %v407_v45 = vpop.f32.mrf.mxu0 }
 0x18d   : >> { %v416_v46 = vsub.f32 0.0, %v406_v44  ;;  %v408_v47 = vadd.f32 %v407_v45, %v319_v42  ;;  %v458_v42 = vpop.permute.xlu1 %457 }
 0x18e   : >> { %v411_v48 = vpop.f32.mrf.mxu0 }
 0x18f   : >> { %v420_v49 = vmul.f32 1.442695, %v416_v46  ;;  %v417_v50 = vsub.f32 0.0, %v408_v47  ;;  %v412_v51 = vadd.f32 %v411_v48, %v323_v41  ;;  %v462_v46 = vpop.permute.xlu0 %461 }
 0x190   : >> { %v413_v52 = vpop.f32.mrf.mxu0 }
 0x191   : >> { %1130 = vpow2.f32 %v420_v49  ;;  %v422_v53 = vmul.f32 1.442695, %v417_v50  ;;  %v418_v54 = vsub.f32 0.0, %v412_v51  ;;  %v414_v55 = vadd.f32 %v413_v52, %v323_v41 }
 0x193   : >> { %1132 = vpow2.f32 %v422_v53  ;;  %v424_v56 = vmul.f32 1.442695, %v418_v54  ;;  %v419_v57 = vsub.f32 0.0, %v414_v55 }
 0x195   : >> { %1134 = vpow2.f32 %v424_v56  ;;  %v426_v58 = vmul.f32 1.442695, %v419_v57 }
 0x197   : >> { %1136 = vpow2.f32 %v426_v58 }
 0x19e   : >> { %v1131_v59 = vpop.eup %1130 }
 0x19f   : >> { %v428_v60 = vadd.f32 1.0, %v1131_v59 }
 0x1a0   : >> { %v1133_v61 = vpop.eup %1132 }
 0x1a1   : >> { %1138 = vrcp.f32 %v428_v60  ;;  %v429_v62 = vadd.f32 1.0, %v1133_v61 }
 0x1a2   : >> { %v1135_v63 = vpop.eup %1134 }
 0x1a3   : >> { %1140 = vrcp.f32 %v429_v62  ;;  %v430_v10 = vadd.f32 1.0, %v1135_v63 }
 0x1a4   : >> { %v1137_v11 = vpop.eup %1136 }
 0x1a5   : >> { %1142 = vrcp.f32 %v430_v10  ;;  %v431_v12 = vadd.f32 1.0, %v1137_v11 }
 0x1a7   : >> { %1144 = vrcp.f32 %v431_v12 }
 0x1ae   : >> { %v1139_v14 = vpop.eup %1138 }
 0x1af   : >> { %v440_v15 = vsub.f32 1.0, %v1139_v14  ;;  %v436_v35 = vmul.f32 %v1139_v14, %v406_v44 }
 0x1b0   : >> { %v1141_v16 = vpop.eup %1140 }
 0x1b1   : >> { %v444_v17 = vmul.f32 %v440_v15, %v406_v44  ;;  %v441_v18 = vsub.f32 1.0, %v1141_v16  ;;  %v437_v30 = vmul.f32 %v1141_v16, %v408_v47 }
 0x1b2   : >> { %v1143_v19 = vpop.eup %1142 }
 0x1b3   : >> { %v448_v20 = vadd.f32 1.0, %v444_v17  ;;  %v445_v21 = vmul.f32 %v441_v18, %v408_v47  ;;  %v442_v22 = vsub.f32 1.0, %v1143_v19  ;;  %v438_v28 = vmul.f32 %v1143_v19, %v412_v51 }
 0x1b4   : >> { %v1145_v23 = vpop.eup %1144 }
 0x1b5   : >> { %v439_v24 = vmul.f32 %v1145_v23, %v414_v55  ;;  %v1413_v25 = vmul.f32 %v1139_v14, %v448_v20  ;;  %v449_v26 = vadd.f32 1.0, %v445_v21  ;;  %v446_v27 = vmul.f32 %v442_v22, %v412_v51 }
 0x1b6   : >> { %v443_v29 = vsub.f32 1.0, %v1145_v23 }
 0x1b7   : >> { %1019 = vmatprep.subr.msk.mxu1 %vm332_vm0, %v439_v24  ;;  %v1416_v32 = vmul.f32 %v1141_v16, %v449_v26  ;;  %v450_v34 = vadd.f32 1.0, %v446_v27 }
 0x1b8   : >> { %1020 = vmatpush1.msk.msra.mxu1 %vm332_vm0, %v438_v28  ;;  %v447_v36 = vmul.f32 %v443_v29, %v414_v55 }
 0x1b9   : >> { %506 = vmatprep.subr.mxu1 %v437_v30  ;;  %v1419_v39 = vmul.f32 %v1143_v19, %v450_v34 }
 0x1ba   : >> { %507 = vmatpush1.msra.mxu1 %v436_v35  ;;  %v451_v40 = vadd.f32 1.0, %v447_v36 }
 0x1bb   : >> { %1021 = vmatmul.mubr.msk.f32.vlgmr.msra.gmra.mxu1 %vm325_vm1, %v1339_v4 }
 0x1bc   : >> { %546 = vmatprep.mubr.f32.mxu1 %v1235_v13  ;;  %v1424_v41 = vmul.f32 %v1145_v23, %v451_v40  ;;  %v595_v40 = vpop.permute.xlu1 %594 }
 0x1bf   : >> { %1022 = vmatmul.mubr.msk.f32.gmra.mxu1 %vm325_vm1, %v1349_v6 }
 0x1c0   : >> { %770 = vmatprep.mubr.f32.mxu1 %v1235_v13 }
 0x27b   : >> { %v542_v43 = vpop.f32.mrf.mxu1 }
 0x27c   : >> { %v543_v44 = vadd.f32 %v542_v43, %v458_v42 }
 0x27d   : >> { %v544_v45 = vpop.f32.mrf.mxu1 }
 0x27e   : >> { %v553_v47 = vsub.f32 0.0, %v543_v44  ;;  %v545_v48 = vadd.f32 %v544_v45, %v458_v42  ;;  %v591_v45 = vpop.permute.xlu0 %590 }
 0x27f   : >> { %v548_v49 = vpop.f32.mrf.mxu1 }
 0x280   : >> { %v557_v50 = vmul.f32 1.442695, %v553_v47  ;;  %v554_v51 = vsub.f32 0.0, %v545_v48  ;;  %v549_v52 = vadd.f32 %v548_v49, %v462_v46 }
 0x281   : >> { %v550_v53 = vpop.f32.mrf.mxu1 }
 0x282   : >> { %1146 = vpow2.f32 %v557_v50  ;;  %v559_v54 = vmul.f32 1.442695, %v554_v51  ;;  %v555_v55 = vsub.f32 0.0, %v549_v52  ;;  %v551_v56 = vadd.f32 %v550_v53, %v462_v46 }
 0x284   : >> { %1148 = vpow2.f32 %v559_v54  ;;  %v561_v57 = vmul.f32 1.442695, %v555_v55  ;;  %v556_v58 = vsub.f32 0.0, %v551_v56 }
 0x286   : >> { %1150 = vpow2.f32 %v561_v57  ;;  %v563_v59 = vmul.f32 1.442695, %v556_v58 }
 0x288   : >> { %1152 = vpow2.f32 %v563_v59 }
 0x28f   : >> { %v1147_v60 = vpop.eup %1146 }
 0x290   : >> { %v565_v61 = vadd.f32 1.0, %v1147_v60 }
 0x291   : >> { %v1149_v62 = vpop.eup %1148 }
 0x292   : >> { %1154 = vrcp.f32 %v565_v61  ;;  %v566_v63 = vadd.f32 1.0, %v1149_v62 }
 0x293   : >> { %v1151_v10 = vpop.eup %1150 }
 0x294   : >> { %1156 = vrcp.f32 %v566_v63  ;;  %v567_v11 = vadd.f32 1.0, %v1151_v10 }
 0x295   : >> { %v1153_v12 = vpop.eup %1152 }
 0x296   : >> { %1158 = vrcp.f32 %v567_v11  ;;  %v568_v14 = vadd.f32 1.0, %v1153_v12 }
 0x298   : >> { %1160 = vrcp.f32 %v568_v14 }
 0x29f   : >> { %v1155_v15 = vpop.eup %1154 }
 0x2a0   : >> { %v573_v17 = vsub.f32 1.0, %v1155_v15 }
 0x2a1   : >> { %v1157_v16 = vpop.eup %1156 }
 0x2a2   : >> { %v574_v18 = vsub.f32 1.0, %v1157_v16  ;;  %v577_v23 = vmul.f32 %v573_v17, %v543_v44 }
 0x2a3   : >> { %v1159_v19 = vpop.eup %1158 }
 0x2a4   : >> { %v578_v20 = vmul.f32 %v574_v18, %v545_v48  ;;  %v575_v21 = vsub.f32 1.0, %v1159_v19  ;;  %v581_v30 = vadd.f32 1.0, %v577_v23 }
 0x2a5   : >> { %v1161_v22 = vpop.eup %1160 }
 0x2a6   : >> { %v579_v24 = vmul.f32 %v575_v21, %v549_v52  ;;  %v576_v26 = vsub.f32 1.0, %v1161_v22  ;;  %v582_v27 = vadd.f32 1.0, %v578_v20  ;;  %v585_v43 = vmul.f32 %v1155_v15, %v581_v30 }
 0x2a8   : >> { %v583_v28 = vadd.f32 1.0, %v579_v24  ;;  %v580_v29 = vmul.f32 %v576_v26, %v551_v56  ;;  %v586_v36 = vmul.f32 %v1157_v16, %v582_v27  ;;  %v597_v48 = vmul.f32 %v591_v45, %v585_v43 }
 0x2aa   : >> { %v584_v34 = vadd.f32 1.0, %v580_v29  ;;  %v587_v35 = vmul.f32 %v1159_v19, %v583_v28  ;;  %v598_v49 = vmul.f32 %v591_v45, %v586_v36 }
 0x2ac   : >> { %v588_v42 = vmul.f32 %v1161_v22, %v584_v34  ;;  %v599_v47 = vmul.f32 %v595_v40, %v587_v35 }
 0x2ae   : >> { %v600_v46 = vmul.f32 %v595_v40, %v588_v42 }
 0x2b0   : >> { %1023 = vmatprep.subr.msk.mxu0 %vm332_vm0, %v600_v46 }
 0x2b1   : >> { %1024 = vmatpush1.msk.msra.mxu0 %vm332_vm0, %v599_v47 }
 0x2b2   : >> { %643 = vmatprep.subr.mxu0 %v598_v49 }
 0x2b3   : >> { %644 = vmatpush1.msra.mxu0 %v597_v48 }
 0x2b4   : >> { %1025 = vmatmul.mubr.msk.f32.vlgmr.msra.gmra.mxu0 %vm325_vm1, %v1359_v8 }
 0x2b5   : >> { %683 = vmatprep.mubr.f32.mxu0 %v1235_v13 }
 0x2b8   : >> { %1026 = vmatmul.mubr.msk.f32.gmra.mxu0 %vm325_vm1, %v1364_v9 }
 0x2b9   : >> { %892 = vmatprep.mubr.f32.mxu0 %v1235_v13 }
 0x374   : >> { %v679_v44 = vpop.f32.mrf.mxu0 }
 0x375   : >> { %v690_v56 = vmul.f32 %v679_v44, %v1413_v25 }
 0x376   : >> { %v681_v50 = vpop.f32.mrf.mxu0 }
 0x377   : >> { %v691_v55 = vmul.f32 %v681_v50, %v1416_v32 }
 0x378   : >> { %v685_v51 = vpop.f32.mrf.mxu0 }
 0x379   : >> { %v692_v54 = vmul.f32 %v685_v51, %v1419_v39 }
 0x37a   : >> { %v687_v52 = vpop.f32.mrf.mxu0 }
 0x37b   : >> { %v693_v53 = vmul.f32 %v687_v52, %v1424_v41 }
 0x37d   : >> { %1027 = vmatprep.subr.msk.mxu1 %vm332_vm0, %v693_v53 }
 0x37e   : >> { %1028 = vmatpush1.msk.msra.mxu1 %vm332_vm0, %v692_v54 }
 0x37f   : >> { %736 = vmatprep.subr.mxu1 %v691_v55 }
 0x380   : >> { %737 = vmatpush1.msra.mxu1 %v690_v56 }
 0x381   : >> { %1029 = vmatmul.mubr.msk.f32.vlgmr.msra.gmra.mxu1 %vm325_vm1, %v1344_v5 }
 0x382   : >> { %776 = vmatprep.mubr.f32.mxu1 %v1235_v13  ;;  %v803_v13 = vpop.trf.xlu1 }
 0x385   : >> { %1030 = vmatmul.mubr.msk.f32.gmra.mxu1 %vm325_vm1, %v1354_v7 }
 0x441   : >> { %v772_v41 = vpop.f32.mrf.mxu1 }
 0x442   : >> { %v783_v60 = vmul.f32 %v772_v41, %v1400_v37 }
 0x443   : >> { %v774_v32 = vpop.f32.mrf.mxu1 }
 0x444   : >> { %v784_v59 = vmul.f32 %v774_v32, %v1402_v38 }
 0x445   : >> { %v778_v39 = vpop.f32.mrf.mxu1 }
 0x446   : >> { %v785_v58 = vmul.f32 %v778_v39, %v1393_v31 }
 0x447   : >> { %v780_v57 = vpop.f32.mrf.mxu1 }
 0x448   : >> { %v786_v25 = vmul.f32 %v780_v57, %v1395_v33 }
 0x44a   : >> { %1031 = vmatprep.subr.msk.mxu0 %vm332_vm0, %v786_v25 }
 0x44b   : >> { %1032 = vmatpush1.msk.msra.mxu0 %vm332_vm0, %v785_v58 }
 0x44c   : >> { %858 = vmatprep.subr.mxu0 %v784_v59 }
 0x44d   : >> { %859 = vmatpush1.msra.mxu0 %v783_v60 }
 0x44e   : >> { %1033 = vmatmul.mubr.msk.f32.vlgmr.msra.gmra.mxu0 %vm325_vm1, %v803_v13 }
 0x50e   : >> { %v894_v61 = vpop.f32.mrf.mxu0 }
 0x50f   : > { %192 = sbr.rel (!%p190_p11) target bundleno = 23 (0x17), region = 79 }
 0x510   : >> { %v896_v62 = vpop.f32.mrf.mxu0 }
 0x511   : >> { %v901_v33 = vcombine.low %v894_v61, %v896_v62 }
 0x513   : >> { %1035 = vst.sshfl [vmem:[%s911_s17] sm:$0x33 pattern:$0x76325410] %v901_v33 }
 0x514   : > { %1175 = shalt.err (!%p1172_p4)
}
 0x515   : > { %s1176_s24 = scalar_lea.hbm %s1466_s27, 128  ;;  %s1180_s8 = scalar_lea.hbm %s1517_s3, 256 }
 0x516   : > { %p1177_p7 = scmp.ne.s32.totalorder %s1466_s27, %s1176_s24  ;;  %p1181_p10 = scmp.lt.s32.totalorder %s1466_s27, %s1517_s3 }
 0x517   : > { %p1182_p11 = scmp.lt.s32.totalorder %s1180_s8, %s1176_s24 }
 0x518   : > { %p1178_p8 = pnand %p1177_p7, %p1300_p5 }
 0x519   : > { %p1183_p12 = por %p1182_p11, %p1181_p10 }
 0x51a   : > { %p1179_p9 = pneg %p1178_p8 }
 0x51c   : > { %p1184_p13 = pnand %p1183_p12, %p1179_p9 }
 0x51e   : > { %1187 = shalt.err (!%p1184_p13)
}
 0x51f   : > { %s1240_s25 = smov 64   ;;  %s1241_s11 = smov 4  }
 0x520   : > { %1047 = dma.vmem_to_hbm [thread:$0]  (%p1300_p5), %s1470_s28, 128, %s1466_s27, %s1474_s29, %s1240_s25, %s1240_s25, %s1241_s11  }
 0x521 PF: > { %p1053_p0 = scmp.ge.s32.totalorder %s1226_s15, 2  ;;  %s943_s17 = sand.u32 1, %s1214_s12  }
 0x522   : > { %s944_s19 = scalar_lea.sflag [#allocation3], %s943_s17 }
 0x523   : > { %p1050_p1 = pnand %p1053_p0, %p1304_p6 }
 0x525   : > { %p1051_p2 = pneg %p1050_p1 }
 0x527   : > { %1209 = dma.done.wait (%p1051_p2), %s944_s19, 128  }
 0x528   : > { %1211 = vsyncadd (%p1051_p2), %s944_s19, 4294967168  ;;  %p13_p3 = scmp.ge.s32.totalorder %s1287_s18, 4   ;;  %s1520_s12 = smov %s1218_s13 }
 0x529   : > { %s1521_s13 = smov %s1222_s14  ;;  %s1522_s14 = smov %s1298_s21 }
 0x52a   : > { %s1523_s15 = smov %s1287_s18  ;;  %15 = sbr.rel (!%p13_p3) target bundleno = 3 (0x3), region = 90 }
 0x52f   :  { %949 = vsyncpa [#allocation3], 1 }
 0x530   :  { %951 = vsyncpa [#allocation3 + $0x1], 1 }

</bundles_post_ra>
